<compile_context>
chip_gen: v6e
topology: v6e:2x2x1
jax: 0.10.0
libtpu: 0.0.40
codegen_flags: <defaults>
</compile_context>

<pallas_src>
import jax
import jax.numpy as jnp
from jax.experimental import pallas as pl
from jax.experimental.pallas import tpu as pltpu


def _concat_type_emb_kernel(emb_ref, ids_ref, table_ref, out_ref):
    # emb_ref   : (tm, H)   mention embedding tile (VMEM)
    # ids_ref   : (tm, 1)   int32 mention-type ids (VMEM, lane-padded)
    # table_ref : (T, H)    full embedding table (constant-index VMEM block)
    # out_ref   : (tm, 2H)  concat([emb, table[ids]], axis=-1)
    tm, hidden = emb_ref.shape
    n_types = table_ref.shape[0]

    # Pass-through half.  Lane-aligned (unmasked vst) when H % 128 == 0.
    out_ref[:, :hidden] = emb_ref[...]

    # Embedding lookup as a small T-way select chain (T = num mention types is
    # small for this module).  Pure VPU work, no iota/one-hot vreg pressure.
    # Out-of-range ids fall through to zeros (nn.Embedding would error).
    ids = ids_ref[...]                                     # (tm, 1) int32
    table = table_ref[...].astype(out_ref.dtype)           # (T, H)
    type_emb = jnp.zeros((tm, hidden), dtype=out_ref.dtype)
    for t in range(n_types):                               # static trip count
        type_emb = jnp.where(ids == t, table[t][None, :], type_emb)

    out_ref[:, hidden:] = type_emb
    # TODO(synk): training-mode dropout (p=0.1) omitted; eval-mode forward (identity).


def mention_type_concat_encode(batch_mention_emb, mention_type_ids,
                               embedding_table, *, tm=2048):
    """Pallas forward of MentionTypeConcatEncoder (eval mode).

    batch_mention_emb: (..., H) float
    mention_type_ids : (...,)   integer ids into the embedding table
    embedding_table  : (num_ment_types, H)
    returns          : (..., 2H)
    """
    hidden = batch_mention_emb.shape[-1]
    n_types = embedding_table.shape[0]
    lead_shape = batch_mention_emb.shape[:-1]
    out_dtype = batch_mention_emb.dtype
    itemsize = jnp.dtype(out_dtype).itemsize
    tbl_itemsize = jnp.dtype(embedding_table.dtype).itemsize

    emb = batch_mention_emb.reshape(-1, hidden)
    ids = jnp.asarray(mention_type_ids, jnp.int32).reshape(-1, 1)
    M = emb.shape[0]
    m8 = ((M + 7) // 8) * 8

    # ---- VMEM-aware tile cap -------------------------------------------------
    # Per-row bytes of the double-buffered working set:
    #   emb tile (H*itemsize) + out tile (2H*itemsize) + ids tile lane-padded
    #   to (tm, 128) int32 (= 512 B/row), each double-buffered.
    per_row = 2 * (3 * hidden * itemsize + 128 * 4)
    table_bytes = n_types * hidden * tbl_itemsize
    try:
        phys_vmem = int(pltpu.get_tpu_info().vmem_capacity_bytes)
    except Exception:
        phys_vmem = 64 * 1024 * 1024
    # Target ~75% of the smallest per-TC VMEM (64 MiB on v7x) -> ~48 MiB.
    budget = int(min(phys_vmem, 64 * 1024 * 1024) * 3 // 4)
    tm_cap = max(8, ((budget - 2 * table_bytes) // per_row) // 8 * 8)
    tm_req = max(8, min((tm // 8) * 8, tm_cap))

    # ---- balanced tiles: pick the tile count first, then an even tile size ----
    # Force >= 2 grid steps (when m8 allows) so v7x megacore shards the
    # "parallel" axis across both TensorCores.
    min_tiles = 2 if m8 >= 16 else 1
    n_tiles = max(pl.cdiv(m8, tm_req), min_tiles)
    tm_eff = ((pl.cdiv(m8, n_tiles) + 7) // 8) * 8          # multiple of 8, <= tm_req
    m_pad = n_tiles * tm_eff                                 # padding <= ~8 rows/tile

    if m_pad != M:
        # Padded rows carry id 0 -> valid lookup; their outputs are discarded.
        emb = jnp.pad(emb, ((0, m_pad - M), (0, 0)))
        ids = jnp.pad(ids, ((0, m_pad - M), (0, 0)))

    # Explicit VMEM limit: double-buffered tiles + table + a little headroom,
    # capped at 56 MiB so we never ask for all of v7x's per-TC VMEM.
    working_bytes = tm_eff * per_row + 2 * table_bytes
    vmem_limit = int(min(56 * 1024 * 1024,
                         max(16 * 1024 * 1024, working_bytes + (4 << 20))))

    cost = pl.CostEstimate(
        flops=n_types * m_pad * hidden,          # select-chain VPU work (tiny)
        transcendentals=0,
        bytes_accessed=m_pad * (3 * hidden * itemsize + 4) + table_bytes,
    )

    out = pl.pallas_call(
        _concat_type_emb_kernel,
        out_shape=jax.ShapeDtypeStruct((m_pad, 2 * hidden), out_dtype),
        grid_spec=pltpu.PrefetchScalarGridSpec(
            num_scalar_prefetch=0,
            grid=(n_tiles,),
            in_specs=[
                pl.BlockSpec((tm_eff, hidden), lambda i: (i, 0)),    # mention emb
                pl.BlockSpec((tm_eff, 1), lambda i: (i, 0)),         # type ids
                pl.BlockSpec((n_types, hidden), lambda i: (0, 0)),   # table (constant)
            ],
            out_specs=pl.BlockSpec((tm_eff, 2 * hidden), lambda i: (i, 0)),
        ),
        compiler_params=pltpu.CompilerParams(
            dimension_semantics=("parallel",),
            vmem_limit_bytes=vmem_limit,
        ),
        cost_estimate=cost,
    )(emb, ids, embedding_table)

    out = out[:M]
    return out.reshape(*lead_shape, 2 * hidden)


def mention_type_concat_ref(batch_mention_emb, mention_type_ids, embedding_table):
    type_emb = embedding_table[jnp.asarray(mention_type_ids, jnp.int32)]
    return jnp.concatenate([batch_mention_emb, type_emb], axis=-1)


if __name__ == "__main__":
    batch, num_mentions, hidden, num_ment_types = 2, 8, 32, 7

    key = jax.random.PRNGKey(0)
    k1, k2, k3 = jax.random.split(key, 3)

    batch_mention_emb = jax.random.normal(
        k1, (batch, num_mentions, hidden), dtype=jnp.float32)
    mention_type_ids = jax.random.randint(
        k2, (batch, num_mentions), 0, num_ment_types, dtype=jnp.int32)
    # nn.Embedding-style normal(0, 1) init for the table.
    embedding_table = jax.random.normal(
        k3, (num_ment_types, hidden), dtype=jnp.float32)

    out = mention_type_concat_encode(batch_mention_emb, mention_type_ids, embedding_table)
    out = jax.block_until_ready(out)

    ref = mention_type_concat_ref(batch_mention_emb, mention_type_ids, embedding_table)
    assert out.shape == (batch, num_mentions, 2 * hidden)
    assert jnp.allclose(out, ref, atol=1e-5, rtol=1e-5)

    print("KERNEL_OK")
</pallas_src>

<mosaic_0001>
module attributes {stable_mosaic.version = 11 : i64} {
  func.func @_concat_type_emb_kernel(%arg0: i32, %arg1: memref<8x32xf32, #tpu.memory_space<vmem>>, %arg2: memref<8x1xi32, #tpu.memory_space<vmem>>, %arg3: memref<7x32xf32, #tpu.memory_space<vmem>>, %arg4: memref<8x64xf32, #tpu.memory_space<vmem>>) attributes {dimension_semantics = [#tpu.dimension_semantics<parallel>], iteration_bounds = array<i64: 2>, scalar_prefetch = 0 : i64, scratch_operands = 0 : i64, tpu.core_type = #tpu.core_type<tc>, window_params = [{transform_indices = @transform_0, window_bounds = array<i64: 8, 32>}, {transform_indices = @transform_1, window_bounds = array<i64: 8, 1>}, {pipeline_mode = #tpu.pipeline_mode<synchronous>, transform_indices = @transform_2, window_bounds = array<i64: 7, 32>}, {transform_indices = @transform_3, window_bounds = array<i64: 8, 64>}]} {
    %c0 = arith.constant 0 : index
    %c0_0 = arith.constant 0 : index
    %0 = vector.load %arg1[%c0, %c0_0] : memref<8x32xf32, #tpu.memory_space<vmem>>, vector<8x32xf32>
    %c0_1 = arith.constant 0 : index
    %c0_2 = arith.constant 0 : index
    %1 = vector.load %arg4[%c0_1, %c0_2] : memref<8x64xf32, #tpu.memory_space<vmem>>, vector<8x32xf32>
    tpu.vector_store %arg4[%c0_1, %c0_2], %0 {strides = array<i32>} : memref<8x64xf32, #tpu.memory_space<vmem>>, vector<8x32xf32>,
    %c0_3 = arith.constant 0 : index
    %c0_4 = arith.constant 0 : index
    %2 = vector.load %arg2[%c0_3, %c0_4] : memref<8x1xi32, #tpu.memory_space<vmem>>, vector<8x1xi32>
    %c0_5 = arith.constant 0 : index
    %c0_6 = arith.constant 0 : index
    %3 = vector.load %arg3[%c0_5, %c0_6] : memref<7x32xf32, #tpu.memory_space<vmem>>, vector<7x32xf32>
    %cst = arith.constant 0.000000e+00 : f32
    %4 = vector.broadcast %cst : f32 to vector<8x32xf32>
    %c0_i32 = arith.constant 0 : i32
    %5 = vector.broadcast %c0_i32 : i32 to vector<8x1xi32>
    %6 = arith.cmpi eq, %2, %5 : vector<8x1xi32>
    %7 = vector.extract_strided_slice %3 {offsets = [0, 0], sizes = [1, 32], strides = [1, 1]} : vector<7x32xf32> to vector<1x32xf32>
    %8 = vector.shape_cast %7 : vector<1x32xf32> to vector<32xf32>
    %9 = vector.shape_cast %8 : vector<32xf32> to vector<1x32xf32>
    %10 = vector.shape_cast %6 : vector<8x1xi1> to vector<8x1xi1>
    %11 = vector.broadcast %10 : vector<8x1xi1> to vector<8x32xi1>
    %12 = vector.shape_cast %9 : vector<1x32xf32> to vector<1x32xf32>
    %13 = vector.broadcast %12 : vector<1x32xf32> to vector<8x32xf32>
    %14 = arith.select %11, %13, %4 : vector<8x32xi1>, vector<8x32xf32>
    %c1_i32 = arith.constant 1 : i32
    %15 = vector.broadcast %c1_i32 : i32 to vector<8x1xi32>
    %16 = arith.cmpi eq, %2, %15 : vector<8x1xi32>
    %17 = vector.extract_strided_slice %3 {offsets = [1, 0], sizes = [1, 32], strides = [1, 1]} : vector<7x32xf32> to vector<1x32xf32>
    %18 = vector.shape_cast %17 : vector<1x32xf32> to vector<32xf32>
    %19 = vector.shape_cast %18 : vector<32xf32> to vector<1x32xf32>
    %20 = vector.shape_cast %16 : vector<8x1xi1> to vector<8x1xi1>
    %21 = vector.broadcast %20 : vector<8x1xi1> to vector<8x32xi1>
    %22 = vector.shape_cast %19 : vector<1x32xf32> to vector<1x32xf32>
    %23 = vector.broadcast %22 : vector<1x32xf32> to vector<8x32xf32>
    %24 = arith.select %21, %23, %14 : vector<8x32xi1>, vector<8x32xf32>
    %c2_i32 = arith.constant 2 : i32
    %25 = vector.broadcast %c2_i32 : i32 to vector<8x1xi32>
    %26 = arith.cmpi eq, %2, %25 : vector<8x1xi32>
    %27 = vector.extract_strided_slice %3 {offsets = [2, 0], sizes = [1, 32], strides = [1, 1]} : vector<7x32xf32> to vector<1x32xf32>
    %28 = vector.shape_cast %27 : vector<1x32xf32> to vector<32xf32>
    %29 = vector.shape_cast %28 : vector<32xf32> to vector<1x32xf32>
    %30 = vector.shape_cast %26 : vector<8x1xi1> to vector<8x1xi1>
    %31 = vector.broadcast %30 : vector<8x1xi1> to vector<8x32xi1>
    %32 = vector.shape_cast %29 : vector<1x32xf32> to vector<1x32xf32>
    %33 = vector.broadcast %32 : vector<1x32xf32> to vector<8x32xf32>
    %34 = arith.select %31, %33, %24 : vector<8x32xi1>, vector<8x32xf32>
    %c3_i32 = arith.constant 3 : i32
    %35 = vector.broadcast %c3_i32 : i32 to vector<8x1xi32>
    %36 = arith.cmpi eq, %2, %35 : vector<8x1xi32>
    %37 = vector.extract_strided_slice %3 {offsets = [3, 0], sizes = [1, 32], strides = [1, 1]} : vector<7x32xf32> to vector<1x32xf32>
    %38 = vector.shape_cast %37 : vector<1x32xf32> to vector<32xf32>
    %39 = vector.shape_cast %38 : vector<32xf32> to vector<1x32xf32>
    %40 = vector.shape_cast %36 : vector<8x1xi1> to vector<8x1xi1>
    %41 = vector.broadcast %40 : vector<8x1xi1> to vector<8x32xi1>
    %42 = vector.shape_cast %39 : vector<1x32xf32> to vector<1x32xf32>
    %43 = vector.broadcast %42 : vector<1x32xf32> to vector<8x32xf32>
    %44 = arith.select %41, %43, %34 : vector<8x32xi1>, vector<8x32xf32>
    %c4_i32 = arith.constant 4 : i32
    %45 = vector.broadcast %c4_i32 : i32 to vector<8x1xi32>
    %46 = arith.cmpi eq, %2, %45 : vector<8x1xi32>
    %47 = vector.extract_strided_slice %3 {offsets = [4, 0], sizes = [1, 32], strides = [1, 1]} : vector<7x32xf32> to vector<1x32xf32>
    %48 = vector.shape_cast %47 : vector<1x32xf32> to vector<32xf32>
    %49 = vector.shape_cast %48 : vector<32xf32> to vector<1x32xf32>
    %50 = vector.shape_cast %46 : vector<8x1xi1> to vector<8x1xi1>
    %51 = vector.broadcast %50 : vector<8x1xi1> to vector<8x32xi1>
    %52 = vector.shape_cast %49 : vector<1x32xf32> to vector<1x32xf32>
    %53 = vector.broadcast %52 : vector<1x32xf32> to vector<8x32xf32>
    %54 = arith.select %51, %53, %44 : vector<8x32xi1>, vector<8x32xf32>
    %c5_i32 = arith.constant 5 : i32
    %55 = vector.broadcast %c5_i32 : i32 to vector<8x1xi32>
    %56 = arith.cmpi eq, %2, %55 : vector<8x1xi32>
    %57 = vector.extract_strided_slice %3 {offsets = [5, 0], sizes = [1, 32], strides = [1, 1]} : vector<7x32xf32> to vector<1x32xf32>
    %58 = vector.shape_cast %57 : vector<1x32xf32> to vector<32xf32>
    %59 = vector.shape_cast %58 : vector<32xf32> to vector<1x32xf32>
    %60 = vector.shape_cast %56 : vector<8x1xi1> to vector<8x1xi1>
    %61 = vector.broadcast %60 : vector<8x1xi1> to vector<8x32xi1>
    %62 = vector.shape_cast %59 : vector<1x32xf32> to vector<1x32xf32>
    %63 = vector.broadcast %62 : vector<1x32xf32> to vector<8x32xf32>
    %64 = arith.select %61, %63, %54 : vector<8x32xi1>, vector<8x32xf32>
    %c6_i32 = arith.constant 6 : i32
    %65 = vector.broadcast %c6_i32 : i32 to vector<8x1xi32>
    %66 = arith.cmpi eq, %2, %65 : vector<8x1xi32>
    %67 = vector.extract_strided_slice %3 {offsets = [6, 0], sizes = [1, 32], strides = [1, 1]} : vector<7x32xf32> to vector<1x32xf32>
    %68 = vector.shape_cast %67 : vector<1x32xf32> to vector<32xf32>
    %69 = vector.shape_cast %68 : vector<32xf32> to vector<1x32xf32>
    %70 = vector.shape_cast %66 : vector<8x1xi1> to vector<8x1xi1>
    %71 = vector.broadcast %70 : vector<8x1xi1> to vector<8x32xi1>
    %72 = vector.shape_cast %69 : vector<1x32xf32> to vector<1x32xf32>
    %73 = vector.broadcast %72 : vector<1x32xf32> to vector<8x32xf32>
    %74 = arith.select %71, %73, %64 : vector<8x32xi1>, vector<8x32xf32>
    %c0_7 = arith.constant 0 : index
    %c32 = arith.constant 32 : index
    %75 = vector.load %arg4[%c0_7, %c32] : memref<8x64xf32, #tpu.memory_space<vmem>>, vector<8x32xf32>
    tpu.vector_store %arg4[%c0_7, %c32], %74 {strides = array<i32>} : memref<8x64xf32, #tpu.memory_space<vmem>>, vector<8x32xf32>,
    return
  }
  func.func @transform_0(%arg0: i32) -> (i32, i32) {
    %c0_i32 = arith.constant 0 : i32
    %c0_i32_0 = arith.constant 0 : i32
    return %arg0, %c0_i32 : i32, i32
  }
  func.func @transform_1(%arg0: i32) -> (i32, i32) {
    %c0_i32 = arith.constant 0 : i32
    %c0_i32_0 = arith.constant 0 : i32
    return %arg0, %c0_i32 : i32, i32
  }
  func.func @transform_2(%arg0: i32) -> (i32, i32) {
    %c0_i32 = arith.constant 0 : i32
    %c0_i32_0 = arith.constant 0 : i32
    %c0_i32_1 = arith.constant 0 : i32
    return %c0_i32, %c0_i32_0 : i32, i32
  }
  func.func @transform_3(%arg0: i32) -> (i32, i32) {
    %c0_i32 = arith.constant 0 : i32
    %c0_i32_0 = arith.constant 0 : i32
    return %arg0, %c0_i32 : i32, i32
  }
}

</mosaic_0001>

<bundles_post_ra>
// kernel: tpu_custom_call.1
= control target key start
LH: loop header
LB: loop body
LE: loop exit
PB: predicated region body
PF: predicated region fallthrough
CT: control target
= control target key end

     0   :  { %8 = vsyncpa [#allocation3], 0  ;;  %s687_s0 = inlined_call_operand.vmem [shape: f32[16,32], index: 0, kind: input, shape index: {}]   ;;  %s688_s1 = inlined_call_operand.vmem [shape: s32[16,1], index: 1, kind: input, shape index: {}]   ;;  %s689_s2 = inlined_call_operand.hbm [shape: f32[7,32], index: 2, kind: input, shape index: {}]   ;;  %s690_s3 = inlined_call_operand.hbm [shape: f32[16,64], index: 3, kind: output, shape index: {}]  }
   0x1   :  { %9 = vsyncpa [#allocation4], 0 }
   0x2   :  { %11 = vsyncpa [#allocation4 + $0x1], 0  ;;  %s564_s12 = smov 0   ;;  %s566_s13 = smov 0  }
   0x3   :  { %s568_s14 = smov 0   ;;  %s570_s15 = smov 0  }
   0x4 LB: > { %s585_s16 = sadd.s32 4294967295, %s538_s15   ;;  %s381_s17 = sadd.s32 4294967294, %s538_s15   ;;  %s538_s15 = sphi %s570_s15, %s698_s15   ;;  %s534_s14 = sphi %s568_s14, %s697_s14   ;;  %s530_s13 = sphi %s566_s13, %s696_s13   ;;  %s526_s12 = sphi %s564_s12, %s695_s12  }
   0x5   : > { %s589_s18 = sadd.s32 1, %s538_s15   ;;  %s97_s19 = sadd.s32 1, %s534_s14 }
   0x6   : > { %s94_s20 = ssub.s32 %s538_s15, %s589_s18  ;;  %p107_p0 = scmp.ne.s32.totalorder %s534_s14, %s530_s13 }
   0x7   : > { %p95_p1 = scmp.eq.s32.totalorder %s94_s20, 0  ;;  %p108_p2 = scmp.eq.s32.totalorder %s585_s16, 1 }
   0x8   : > { %p113_p3 = scmp.ne.s32.totalorder %s530_s13, %s526_s12  ;;  %p114_p4 = scmp.eq.s32.totalorder %s381_s17, 1 }
   0x9   : > { %s600_s21 = scalar_select %p95_p1, %s534_s14, %s97_s19  }
   0xa   : > { %p602_p5 = por %p108_p2, %p107_p0  ;;  %p606_p6 = por %p114_p4, %p113_p3 }
   0xb   : > { %p382_p7 = scmp.ge.s32.totalorder %s538_s15, 1  ;;  %p121_p8 = scmp.lt.s32.totalorder %s538_s15, 3 }
   0xc   : > { %s692_s23 = scalar_select %p606_p6, 1, 0 }
   0xd   : > { %p408_p9 = scmp.eq.s32.totalorder %s585_s16, 0  ;;  %p613_p10 = pnand %p382_p7, %p121_p8 }
   0xe   : > { %s540_s25 = smov [#allocation2]  }
   0xf   : > { %s134_s26 = sshll.u32 %s540_s25, 4  ;;  %p400_p11 = pneg %p613_p10  ;;  %s135_s26 = int_to_ptr.vmem [resolvable:$true] %s134_s26 }
  0x10   : > { %s459_s27 = scalar_lea.vmem %s135_s26, 128  ;;  %p467_p3 = scmp.lt.s32.totalorder %s135_s26, %s135_s26 }
  0x11   : > { %p401_p12 = pnand %p408_p9, %p400_p11  ;;  %p460_p0 = scmp.ne.s32.totalorder %s135_s26, %s459_s27 }
  0x12   : > { %p468_p4 = scmp.lt.s32.totalorder %s459_s27, %s459_s27 }
  0x13   : > { %p450_p13 = pneg %p401_p12 }
  0x14   : > { %p469_p6 = por %p468_p4, %p467_p3 }
  0x15   : > { %p462_p1 = pnand %p460_p0, %p450_p13 }
  0x17   : > { %p463_p2 = pneg %p462_p1 }
  0x19   : > { %p470_p7 = pnand %p469_p6, %p463_p2 }
  0x1b   : > { %473 = shalt.err (!%p470_p7)
}
  0x1c   : > { %403 = dma.hbm_to_vmem [thread:$0]  (!%p401_p12), %s689_s2, 128, %s135_s26, [#allocation3]  }
  0x1d   : > { %161 = sbr.rel (%p613_p10) target bundleno = 310 (0x136), region = 32 }
  0x22   : > { %517 = dma.done.wait (%p408_p9), [#allocation3], 128  }
  0x23   : > { %519 = vsyncadd (%p408_p9), [#allocation3], 4294967168  ;;  %p188_p8 = scmp.lt.s32.totalorder %s585_s16, 1  ;;  %v541_v0 = vmov 0   ;;  %v207_v9 = vlaneseq  ;;  %v200_v12 = vld [vmem:[#allocation2] sm:$0x7f] }
  0x24   : > { %447 = vset.pattern.permute.xlu1 %v541_v0  ;;  %446 = vset.pattern.permute.xlu0 %v541_v0  ;;  %s185_s11 = sand.u32 1, %s530_s13   ;;  %vm197_vm7 = vcmask 261120   ;;  %s542_s20 = smov 32   ;;  %vm282_vm15 = vcmask 523520  }
  0x25   : > { %s189_s30 = scalar_select %p188_p8, %s585_s16, 1  ;;  %v208_v10 = vshrl.u32 %v207_v9, 7 }
  0x26   : > { %s387_s17 = sshll.u32 %s185_s11, 3  ;;  %s391_s24 = sshll.u32 %s585_s16, 7 }
  0x27   : > { %s388_s4 = sshll.u32 %s189_s30, 3  ;;  %v209_v11 = vsub.s32 0, %v208_v10  ;;  %v220_v13 = vsub.s32 1, %v208_v10  ;;  %v231_v14 = vsub.s32 2, %v208_v10  ;;  %v242_v17 = vsub.s32 3, %v208_v10  ;;  %s641_s19 = scalar_lea.vmem [#allocation5], %s387_s17 }
  0x28   : > { %s195_s7 = scalar_lea.vmem %s688_s1, %s388_s4  ;;  %s191_s10 = scalar_lea.vmem %s687_s0, %s388_s4  ;;  %v253_v21 = vsub.s32 4, %v208_v10  ;;  %v264_v27 = vsub.s32 5, %v208_v10  ;;  %v275_v30 = vsub.s32 6, %v208_v10 }
  0x29   : > { %v199_v1 = vld [vmem:[%s195_s7] sm:$0xff]  ;;  %v210_v19 = vrot.slane %v200_v12, %v209_v11  ;;  %v221_v20 = vrot.slane %v200_v12, %v220_v13  ;;  %v232_v22 = vrot.slane %v200_v12, %v231_v14  ;;  %v243_v25 = vrot.slane %v200_v12, %v242_v17  ;;  %s298_s25 = sshll.u32 %s641_s19, 4  ;;  %s649_s28 = scalar_lea.hbm %s690_s3, %s391_s24  ;;  %s299_s25 = int_to_ptr.vmem [resolvable:$true] %s298_s25 }
  0x2a   : > { %vm223_vm0 = vcmp.eq.s32.totalorder %v199_v1, 2  ;;  %vm201_vm1 = vcmp.eq.s32.totalorder %v199_v1, 0  ;;  %vm234_vm2 = vcmp.eq.s32.totalorder %v199_v1, 3  ;;  %vm212_vm3 = vcmp.eq.s32.totalorder %v199_v1, 1  ;;  %v196_v18 = vld [vmem:[%s191_s10] sm:$0xff]  ;;  %s285_s29 = scalar_lea.sflag [#allocation4], %s185_s11 }
  0x2b   : > { %v224_v2 = vsel %vm223_vm0, 1, %v541_v0  ;;  %v202_v3 = vsel %vm201_vm1, 1, %v541_v0  ;;  %v235_v4 = vsel %vm234_vm2, 1, %v541_v0  ;;  %v213_v5 = vsel %vm212_vm3, 1, %v541_v0  ;;  %198 = vst.msk [vmem:[%s641_s19] sm:$0xff] %vm197_vm7, %v196_v18  ;;  %s474_s30 = scalar_lea.vmem %s299_s25, 128 }
  0x2c   : > { %226 = vperm.xlu1 %447, %v224_v2   ;;  %204 = vperm.xlu0 %446, %v202_v3   ;;  %vm256_vm4 = vcmp.eq.s32.totalorder %v199_v1, 5  ;;  %vm245_vm5 = vcmp.eq.s32.totalorder %v199_v1, 4  ;;  %vm267_vm6 = vcmp.eq.s32.totalorder %v199_v1, 6  ;;  %v254_v29 = vrot.slane %v200_v12, %v253_v21  ;;  %p475_p6 = scmp.ne.s32.totalorder %s299_s25, %s474_s30  ;;  %s543_s4 = smov [#allocation5]  }
  0x2d   : > { %v257_v6 = vsel %vm256_vm4, 1, %v541_v0  ;;  %v246_v7 = vsel %vm245_vm5, 1, %v541_v0  ;;  %v268_v8 = vsel %vm267_vm6, 1, %v541_v0  ;;  %v265_v35 = vrot.slane %v200_v12, %v264_v27  ;;  %s478_s5 = sshll.u32 %s543_s4, 4  ;;  %s479_s5 = int_to_ptr.vmem [resolvable:$false] %s478_s5 }
  0x2e   : > { %v276_v37 = vrot.slane %v200_v12, %v275_v30  ;;  %p476_p9 = pnand %p475_p6, %p602_p5  ;;  %s480_s16 = scalar_lea.vmem %s479_s5, 256 }
  0x2f   : > { %p481_p11 = scmp.lt.s32.totalorder %s299_s25, %s479_s5  ;;  %p482_p12 = scmp.lt.s32.totalorder %s480_s16, %s474_s30 }
  0x30   : > { %237 = vperm.xlu1 %447, %v235_v4   ;;  %215 = vperm.xlu0 %446, %v213_v5   ;;  %p477_p10 = pneg %p476_p9 }
  0x31   : > { %p483_p13 = por %p482_p12, %p481_p11 }
  0x33   : > { %p484_p0 = pnand %p483_p13, %p477_p10 }
  0x34   : > { %259 = vperm.xlu1 %447, %v257_v6   ;;  %248 = vperm.xlu0 %446, %v246_v7  }
  0x38   : > { %270 = vperm.xlu0 %446, %v268_v8  }
  0xa7   : > { %v227_v15 = vpop.permute.xlu1 %226  ;;  %v205_v16 = vpop.permute.xlu0 %204 }
  0xa8   : > { %vm206_vm8 = vcmp.eq.s32.totalorder %v205_v16, 1  ;;  %vm228_vm10 = vcmp.eq.s32.totalorder %v227_v15, 1 }
  0xa9   : > { %v211_v26 = vsel %vm206_vm8, %v210_v19, 0.0 }
  0xab   : > { %v238_v23 = vpop.permute.xlu1 %237  ;;  %v216_v24 = vpop.permute.xlu0 %215 }
  0xac   : > { %vm217_vm9 = vcmp.eq.s32.totalorder %v216_v24, 1  ;;  %vm239_vm11 = vcmp.eq.s32.totalorder %v238_v23, 1 }
  0xad   : > { %v222_v28 = vsel %vm217_vm9, %v221_v20, %v211_v26 }
  0xae   : > { %v233_v31 = vsel %vm228_vm10, %v232_v22, %v222_v28 }
  0xaf   : > { %v260_v32 = vpop.permute.xlu1 %259  ;;  %v244_v33 = vsel %vm239_vm11, %v243_v25, %v233_v31  ;;  %v249_v34 = vpop.permute.xlu0 %248 }
  0xb0   : > { %vm250_vm12 = vcmp.eq.s32.totalorder %v249_v34, 1  ;;  %vm261_vm13 = vcmp.eq.s32.totalorder %v260_v32, 1 }
  0xb1   : > { %v255_v36 = vsel %vm250_vm12, %v254_v29, %v244_v33 }
  0xb2   : > { %v266_v39 = vsel %vm261_vm13, %v265_v35, %v255_v36 }
  0xb3   : > { %v271_v38 = vpop.permute.xlu0 %270 }
  0xb4   : > { %vm272_vm14 = vcmp.eq.s32.totalorder %v271_v38, 1 }
  0xb5   : > { %v277_v40 = vsel %vm272_vm14, %v276_v37, %v266_v39 }
  0xb6   : > { %279 = vrot.lane.b32.xlu1 %v277_v40, %s542_s20 }
 0x128   : > { %v280_v41 = vpop.permute.xlu1 %279 }
 0x129   : > { %283 = vst.msk [vmem:[%s641_s19] sm:$0xff] %vm282_vm15, %v280_v41 }
 0x12a   : > { %487 = shalt.err (!%p484_p0)
}
 0x12b   : > { %s488_s6 = scalar_lea.hbm %s649_s28, 128  ;;  %s492_s9 = scalar_lea.hbm %s690_s3, 256 }
 0x12c   : > { %p489_p1 = scmp.ne.s32.totalorder %s649_s28, %s488_s6  ;;  %p493_p4 = scmp.lt.s32.totalorder %s649_s28, %s690_s3 }
 0x12d   : > { %p494_p7 = scmp.lt.s32.totalorder %s492_s9, %s488_s6 }
 0x12e   : > { %p490_p2 = pnand %p489_p1, %p602_p5 }
 0x12f   : > { %p495_p8 = por %p494_p7, %p493_p4 }
 0x130   : > { %p491_p3 = pneg %p490_p2 }
 0x132   : > { %p496_p6 = pnand %p495_p8, %p491_p3 }
 0x134   : > { %499 = shalt.err (!%p496_p6)
}
 0x135   : > { %398 = dma.vmem_to_hbm [thread:$0]  (%p602_p5), %s299_s25, 128, %s649_s28, %s285_s29  }
 0x136 PF: > { %p410_p9 = scmp.ge.s32.totalorder %s538_s15, 2  ;;  %s310_s17 = sand.u32 1, %s526_s12  }
 0x137   : > { %p694_p10 = scmp.ne.s32.totalorder %s692_s23, 0  ;;  %s311_s19 = scalar_lea.sflag [#allocation4], %s310_s17 }
 0x139   : > { %p405_p11 = pnand %p410_p9, %p694_p10 }
 0x13b   : > { %p406_p12 = pneg %p405_p11 }
 0x13d   : > { %521 = dma.done.wait (%p406_p12), %s311_s19, 128  }
 0x13e   : > { %523 = vsyncadd (%p406_p12), %s311_s19, 4294967168  ;;  %p14_p13 = scmp.ge.s32.totalorder %s589_s18, 4   ;;  %s695_s12 = smov %s530_s13 }
 0x13f   : > { %s696_s13 = smov %s534_s14  ;;  %s697_s14 = smov %s600_s21 }
 0x140   : > { %s698_s15 = smov %s589_s18  ;;  %16 = sbr.rel (!%p14_p13) target bundleno = 4 (0x4), region = 75 }
 0x145   :  { %316 = vsyncpa [#allocation3], 1 }
 0x146   :  { %318 = vsyncpa [#allocation3 + $0x1], 1 }
 0x147   :  { %319 = vsyncpa [#allocation4], 1 }
 0x148   :  { %321 = vsyncpa [#allocation4 + $0x1], 1 }

</bundles_post_ra>
